<compile_context>
chip_gen: v7x
topology: tpu7x:2x2x1
jax: 0.10.0
libtpu: 0.0.40
codegen_flags: <defaults>
</compile_context>

<pallas_src>
import functools
import math

import jax
import jax.numpy as jnp
from jax.experimental import pallas as pl
from jax.experimental.pallas import tpu as pltpu

_GELU_C1 = math.sqrt(2.0 / math.pi)
_GELU_C2 = _GELU_C1 * 0.044715


def _cdiv(a, b):
    return -(-a // b)


def _round_up(x, m):
    return ((x + m - 1) // m) * m


def _gelu_tanh(h):
    # == torch.nn.GELU(approximate='tanh'); h is f32.
    inner = h * (_GELU_C1 + _GELU_C2 * (h * h))
    return 0.5 * h * (1.0 + jnp.tanh(inner))


def _mlp_resident_kernel(x_ref, wfc_ref, bfc_ref, wproj_ref, bproj_ref, o_ref,
                         *, hchunk, nchunks):
    # Weights fully resident in VMEM; hidden dim processed in static chunks so
    # the (tm, hchunk) f32 intermediate (+ bf16 cast) stays bounded.
    x = x_ref[...]
    if x.dtype != wfc_ref.dtype:
        x = x.astype(wfc_ref.dtype)

    def contrib(c):
        lo = c * hchunk  # static python int -> free ref view
        h = jnp.dot(x, wfc_ref[:, lo:lo + hchunk],
                    preferred_element_type=jnp.float32)
        h = h + bfc_ref[:, lo:lo + hchunk].astype(jnp.float32)
        h = _gelu_tanh(h)
        return jnp.dot(h.astype(wproj_ref.dtype), wproj_ref[lo:lo + hchunk, :],
                       preferred_element_type=jnp.float32)

    # Fold b_proj into the first contribution: no zero-init, no finalize add.
    acc = contrib(0) + bproj_ref[...].astype(jnp.float32)
    for c in range(1, nchunks):
        acc = acc + contrib(c)
    o_ref[...] = acc.astype(o_ref.dtype)


def _mlp_stream_kernel(x_ref, wfc_ref, bfc_ref, wproj_ref, bproj_ref, o_ref,
                       acc_ref):
    # 2-D grid (row tiles, hidden tiles); reduction over hidden tiles into a
    # (tm, C) f32 VMEM accumulator.
    k = pl.program_id(1)

    x = x_ref[...]
    if x.dtype != wfc_ref.dtype:
        x = x.astype(wfc_ref.dtype)

    h = jnp.dot(x, wfc_ref[...], preferred_element_type=jnp.float32)
    h = h + bfc_ref[...].astype(jnp.float32)
    h = _gelu_tanh(h)
    contrib = jnp.dot(h.astype(wproj_ref.dtype), wproj_ref[...],
                      preferred_element_type=jnp.float32)

    @pl.when(k == 0)
    def _():
        # Initialize with the first contribution + bias (no zero store).
        acc_ref[...] = contrib + bproj_ref[...].astype(jnp.float32)

    @pl.when(k != 0)
    def _():
        acc_ref[...] += contrib

    @pl.when(k == pl.num_programs(1) - 1)
    def _():
        o_ref[...] = acc_ref[...].astype(o_ref.dtype)


def mlp_pallas(x, w_fc, b_fc, w_proj, b_proj, *, tm=None, th=None,
               use_bf16_matmul=False, hchunk_target=1280):
    """x: [B, T, C]; w_fc: [C, 4C]; b_fc: [4C]; w_proj: [4C, C]; b_proj: [C]."""
    B, T, C = x.shape
    H = w_fc.shape[1]
    assert w_fc.shape == (C, H) and w_proj.shape == (H, C)
    assert b_fc.shape == (H,) and b_proj.shape == (C,)
    M = B * T
    out_dtype = x.dtype

    # ---- Generation-aware VMEM policy (128 MiB on v5e/v6e, 64 MiB on v7x). ----
    try:
        vmem_cap = int(pltpu.get_tpu_info().vmem_capacity_bytes)
    except Exception:
        vmem_cap = 64 * 1024 * 1024            # conservative (v7x-sized) fallback
    vmem_budget = (vmem_cap * 3) // 4          # planning target
    vmem_cap_limit = (vmem_cap * 85) // 100    # never hand the whole VMEM to one kernel

    # ---- MXU operand dtype: optionally run f32 callers through bf16 MXU. ----
    mxu_dtype = (jnp.bfloat16 if (use_bf16_matmul and x.dtype == jnp.float32)
                 else x.dtype)
    if w_fc.dtype != mxu_dtype:
        w_fc = w_fc.astype(mxu_dtype)
        w_proj = w_proj.astype(mxu_dtype)

    isz = jnp.dtype(x.dtype).itemsize
    wsz = jnp.dtype(w_fc.dtype).itemsize
    osz = jnp.dtype(out_dtype).itemsize
    bsz = jnp.dtype(b_fc.dtype).itemsize
    xcast = C * wsz if x.dtype != w_fc.dtype else 0   # per-row in-kernel cast temp

    x2 = x.reshape(M, C)
    b_fc2 = b_fc.reshape(1, H)
    b_proj2 = b_proj.reshape(1, C)

    def balanced_tile(tmax):
        # Spread rows evenly over the implied trip count (no fixed-tile padding).
        tmax = max(16, _round_up(tmax, 16))
        if M <= tmax:
            return M                       # single full-extent block (always legal)
        n_tiles = _cdiv(M, tmax)
        return min(tmax, _round_up(_cdiv(M, n_tiles), 16))

    def resident_bytes(tm_, hc_):
        return (2 * tm_ * C * isz            # x tile (double-buffered)
                + 2 * tm_ * C * osz          # out tile (double-buffered)
                + 2 * C * H * wsz            # resident W_fc + W_proj (single copy)
                + (H + C) * bsz              # resident biases
                + tm_ * hc_ * (4 + wsz)      # f32 hidden chunk + cast for c_proj
                + tm_ * C * 4                # f32 row accumulator value
                + tm_ * xcast)               # in-kernel bf16 cast of the x tile

    def stream_bytes(tm_, th_):
        return (2 * tm_ * C * isz
                + 2 * tm_ * C * osz
                + 2 * 2 * C * th_ * wsz      # W_fc + W_proj tiles, double-buffered
                + 2 * (th_ + C) * bsz
                + tm_ * th_ * (4 + wsz)      # f32 hidden tile + cast
                + tm_ * C * 4                # f32 accumulator scratch
                + tm_ * xcast)

    def pick_hchunk():
        if H <= hchunk_target:
            return H
        d = (hchunk_target // 128) * 128
        while d >= 128:
            if H % d == 0:
                return d
            d -= 128
        return H

    forced_stream = th is not None and th < H

    use_resident = False
    tm_res = hchunk = None
    if not forced_stream:
        hchunk = pick_hchunk()
        if tm is not None:
            tm_res = min(tm, M)
            assert tm_res == M or tm_res % 8 == 0
        else:
            tm_res = balanced_tile(512 if wsz <= 2 else 256)
            while resident_bytes(tm_res, hchunk) > vmem_budget and tm_res > 64:
                tm_res = max(64, _round_up(tm_res // 2, 16))
        use_resident = resident_bytes(tm_res, hchunk) <= vmem_budget

    args = (x2, w_fc, b_fc2, w_proj, b_proj2)

    if use_resident:
        grid_m = _cdiv(M, tm_res)
        nchunks = H // hchunk
        est = resident_bytes(tm_res, hchunk)
        kernel = functools.partial(_mlp_resident_kernel,
                                   hchunk=hchunk, nchunks=nchunks)
        cost = pl.CostEstimate(
            flops=4 * grid_m * tm_res * C * H,
            transcendentals=grid_m * tm_res * H,
            bytes_accessed=int(M * C * (isz + osz) + 2 * C * H * wsz
                               + (H + C) * bsz),
        )

        def build(single_buffer):
            extra = 0 if single_buffer else 2 * C * H * wsz
            limit = int(min(max(est + extra + (8 << 20), 32 << 20),
                            vmem_cap_limit))
            if single_buffer:
                def wspec(shape):
                    return pl.BlockSpec(shape, lambda i: (0, 0),
                                        pipeline_mode=pl.Buffered(1))
            else:
                def wspec(shape):
                    return pl.BlockSpec(shape, lambda i: (0, 0))
            return pl.pallas_call(
                kernel,
                out_shape=jax.ShapeDtypeStruct((M, C), out_dtype),
                grid_spec=pltpu.PrefetchScalarGridSpec(
                    num_scalar_prefetch=0,
                    grid=(grid_m,),
                    in_specs=[
                        pl.BlockSpec((tm_res, C), lambda i: (i, 0)),   # x
                        wspec((C, H)),                                 # W_fc   (resident)
                        wspec((1, H)),                                 # b_fc   (resident)
                        wspec((H, C)),                                 # W_proj (resident)
                        wspec((1, C)),                                 # b_proj (resident)
                    ],
                    out_specs=pl.BlockSpec((tm_res, C), lambda i: (i, 0)),
                ),
                compiler_params=pltpu.CompilerParams(
                    dimension_semantics=("parallel",),
                    vmem_limit_bytes=limit),
                cost_estimate=cost,
            )

        try:
            out = build(single_buffer=True)(*args)
        except Exception as e:
            # Only fall back if this Pallas build rejects single-buffered
            # (pipeline_mode / Buffered) block specs; anything else re-raises.
            msg = f"{type(e).__name__}: {e}".lower()
            if "buffer" not in msg and "pipeline" not in msg:
                raise
            out = build(single_buffer=False)(*args)
    else:
        # ---- Streaming path: weights re-fetched per row tile -> big tm. ----
        if tm is not None:
            tm_s = min(tm, M)
            assert tm_s == M or tm_s % 8 == 0
        else:
            tm_s = balanced_tile(1024 if wsz <= 2 else 512)
        th_s = th if th is not None else H
        if th is None:
            # Prefer 256-aligned hidden tiles >= 512 (v6e/v7x MXU is 256-wide).
            while (stream_bytes(tm_s, th_s) > vmem_budget and th_s % 2 == 0
                   and th_s // 2 >= 512 and (th_s // 2) % 256 == 0):
                th_s //= 2
            while (stream_bytes(tm_s, th_s) > vmem_budget and th_s % 2 == 0
                   and (th_s // 2) % 128 == 0):
                th_s //= 2
        assert H % th_s == 0, "hidden tile must divide 4*C"
        nk = H // th_s
        grid_m = _cdiv(M, tm_s)
        est = stream_bytes(tm_s, th_s)
        limit = int(min(max(est + (8 << 20), 32 << 20), vmem_cap_limit))

        cost = pl.CostEstimate(
            flops=4 * grid_m * tm_s * C * H,
            transcendentals=grid_m * tm_s * H,
            bytes_accessed=int(M * C * (isz + osz)
                               + grid_m * 2 * C * H * wsz   # weights re-streamed
                               + (H + C) * bsz),
        )

        out = pl.pallas_call(
            _mlp_stream_kernel,
            out_shape=jax.ShapeDtypeStruct((M, C), out_dtype),
            grid_spec=pltpu.PrefetchScalarGridSpec(
                num_scalar_prefetch=0,
                grid=(grid_m, nk),
                in_specs=[
                    pl.BlockSpec((tm_s, C), lambda i, k: (i, 0)),   # x
                    pl.BlockSpec((C, th_s), lambda i, k: (0, k)),   # W_fc tile
                    pl.BlockSpec((1, th_s), lambda i, k: (0, k)),   # b_fc tile
                    pl.BlockSpec((th_s, C), lambda i, k: (k, 0)),   # W_proj tile
                    pl.BlockSpec((1, C), lambda i, k: (0, 0)),      # b_proj
                ],
                out_specs=pl.BlockSpec((tm_s, C), lambda i, k: (i, 0)),
                scratch_shapes=[pltpu.VMEM((tm_s, C), jnp.float32)],
            ),
            compiler_params=pltpu.CompilerParams(
                dimension_semantics=("parallel", "arbitrary"),
                vmem_limit_bytes=limit),
            cost_estimate=cost,
        )(*args)

    return out.reshape(B, T, C)


def _mlp_reference(x2, w_fc, b_fc, w_proj, b_proj):
    h = jnp.dot(x2, w_fc) + b_fc
    h = 0.5 * h * (1.0 + jnp.tanh(_GELU_C1 * (h + 0.044715 * (h ** 3))))
    return jnp.dot(h, w_proj) + b_proj


if __name__ == "__main__":
    # Small GPT-2-style config with lane-friendly dims: n_embd=128 -> hidden=512.
    B, T, C = 2, 8, 128
    H = 4 * C

    key = jax.random.PRNGKey(0)
    kx, kwf, kbf, kwp, kbp = jax.random.split(key, 5)

    bound_fc = 1.0 / math.sqrt(C)
    bound_proj = 1.0 / math.sqrt(H)
    x = jax.random.normal(kx, (B, T, C), dtype=jnp.float32)
    w_fc = jax.random.uniform(kwf, (C, H), jnp.float32, -bound_fc, bound_fc)
    b_fc = jax.random.uniform(kbf, (H,), jnp.float32, -bound_fc, bound_fc)
    w_proj = jax.random.uniform(kwp, (H, C), jnp.float32, -bound_proj, bound_proj)
    b_proj = jax.random.uniform(kbp, (C,), jnp.float32, -bound_proj, bound_proj)

    ref = _mlp_reference(x.reshape(-1, C), w_fc, b_fc,
                         w_proj, b_proj).reshape(B, T, C)

    # 1) Default: resident weights (1-D grid), f32 MXU operands, no padding.
    out = jax.block_until_ready(mlp_pallas(x, w_fc, b_fc, w_proj, b_proj))
    assert out.shape == (B, T, C)
    assert jnp.allclose(out, ref, atol=1e-4, rtol=1e-4), "mismatch (resident)"

    # 2) Streaming path: force row + hidden tiling (accumulator / pl.when path).
    out2 = jax.block_until_ready(
        mlp_pallas(x, w_fc, b_fc, w_proj, b_proj, tm=8, th=128))
    assert jnp.allclose(out2, ref, atol=1e-4, rtol=1e-4), "mismatch (streamed)"

    # 3) Ragged M with a partial last row tile (masked store, no host pad/slice).
    x3 = x[:, :5, :]
    ref3 = _mlp_reference(x3.reshape(-1, C), w_fc, b_fc,
                          w_proj, b_proj).reshape(B, 5, C)
    out3 = jax.block_until_ready(mlp_pallas(x3, w_fc, b_fc, w_proj, b_proj, tm=8))
    assert jnp.allclose(out3, ref3, atol=1e-4, rtol=1e-4), "mismatch (ragged M)"

    # 4) bf16 MXU operands for f32 callers (f32 accumulation / f32 GELU math).
    out4 = jax.block_until_ready(
        mlp_pallas(x, w_fc, b_fc, w_proj, b_proj, use_bf16_matmul=True))
    assert jnp.allclose(out4, ref, atol=5e-2, rtol=5e-2), "mismatch (bf16 MXU)"

    print("KERNEL_OK")
</pallas_src>

<mosaic_0001>
module attributes {stable_mosaic.version = 11 : i64} {
  func.func @_mlp_resident_kernel(%arg0: i32, %arg1: memref<16x128xf32, #tpu.memory_space<vmem>>, %arg2: memref<128x512xf32, #tpu.memory_space<vmem>>, %arg3: memref<1x512xf32, #tpu.memory_space<vmem>>, %arg4: memref<512x128xf32, #tpu.memory_space<vmem>>, %arg5: memref<1x128xf32, #tpu.memory_space<vmem>>, %arg6: memref<16x128xf32, #tpu.memory_space<vmem>>) attributes {dimension_semantics = [#tpu.dimension_semantics<parallel>], iteration_bounds = array<i64: 1>, scalar_prefetch = 0 : i64, scratch_operands = 0 : i64, tpu.core_type = #tpu.core_type<tc>, window_params = [{transform_indices = @transform_0, window_bounds = array<i64: 16, 128>}, {pipeline_mode = #tpu.pipeline_mode<synchronous>, transform_indices = @transform_1, window_bounds = array<i64: 128, 512>}, {pipeline_mode = #tpu.pipeline_mode<synchronous>, transform_indices = @transform_2, window_bounds = array<i64: 1, 512>}, {pipeline_mode = #tpu.pipeline_mode<synchronous>, transform_indices = @transform_3, window_bounds = array<i64: 512, 128>}, {pipeline_mode = #tpu.pipeline_mode<synchronous>, transform_indices = @transform_4, window_bounds = array<i64: 1, 128>}, {transform_indices = @transform_5, window_bounds = array<i64: 16, 128>}]} {
    %c0 = arith.constant 0 : index
    %c0_0 = arith.constant 0 : index
    %0 = vector.load %arg1[%c0, %c0_0] : memref<16x128xf32, #tpu.memory_space<vmem>>, vector<16x128xf32>
    %c0_1 = arith.constant 0 : index
    %c0_2 = arith.constant 0 : index
    %1 = vector.load %arg2[%c0_1, %c0_2] : memref<128x512xf32, #tpu.memory_space<vmem>>, vector<128x512xf32>
    %cst = arith.constant dense<0.000000e+00> : vector<16x512xf32>
    %2 = tpu.matmul %0, %1, %cst {dimension_numbers = #tpu.dot_dimension_numbers<[1], [0], [0], [1], [0, 0, 1, 1], [], []>} : vector<16x128xf32>, vector<128x512xf32>, vector<16x512xf32> -> vector<16x512xf32>
    %c0_3 = arith.constant 0 : index
    %c0_4 = arith.constant 0 : index
    %3 = vector.load %arg3[%c0_3, %c0_4] : memref<1x512xf32, #tpu.memory_space<vmem>>, vector<1x512xf32>
    %4 = vector.broadcast %3 : vector<1x512xf32> to vector<16x512xf32>
    %5 = arith.addf %2, %4 : vector<16x512xf32>
    %6 = arith.mulf %5, %5 : vector<16x512xf32>
    %cst_5 = arith.constant 0.0356774069 : f32
    %7 = vector.broadcast %cst_5 : f32 to vector<16x512xf32>
    %8 = arith.mulf %7, %6 : vector<16x512xf32>
    %cst_6 = arith.constant 0.797884583 : f32
    %9 = vector.broadcast %cst_6 : f32 to vector<16x512xf32>
    %10 = arith.addf %9, %8 : vector<16x512xf32>
    %11 = arith.mulf %5, %10 : vector<16x512xf32>
    %cst_7 = arith.constant 5.000000e-01 : f32
    %12 = vector.broadcast %cst_7 : f32 to vector<16x512xf32>
    %13 = arith.mulf %12, %5 : vector<16x512xf32>
    %14 = math.tanh %11 : vector<16x512xf32>
    %cst_8 = arith.constant 1.000000e+00 : f32
    %15 = vector.broadcast %cst_8 : f32 to vector<16x512xf32>
    %16 = arith.addf %15, %14 : vector<16x512xf32>
    %17 = arith.mulf %13, %16 : vector<16x512xf32>
    %c0_9 = arith.constant 0 : index
    %c0_10 = arith.constant 0 : index
    %18 = vector.load %arg4[%c0_9, %c0_10] : memref<512x128xf32, #tpu.memory_space<vmem>>, vector<512x128xf32>
    %cst_11 = arith.constant dense<0.000000e+00> : vector<16x128xf32>
    %19 = tpu.matmul %17, %18, %cst_11 {dimension_numbers = #tpu.dot_dimension_numbers<[1], [0], [0], [1], [0, 0, 1, 1], [], []>} : vector<16x512xf32>, vector<512x128xf32>, vector<16x128xf32> -> vector<16x128xf32>
    %c0_12 = arith.constant 0 : index
    %c0_13 = arith.constant 0 : index
    %20 = vector.load %arg5[%c0_12, %c0_13] : memref<1x128xf32, #tpu.memory_space<vmem>>, vector<1x128xf32>
    %21 = vector.broadcast %20 : vector<1x128xf32> to vector<16x128xf32>
    %22 = arith.addf %19, %21 : vector<16x128xf32>
    %c0_14 = arith.constant 0 : index
    %c0_15 = arith.constant 0 : index
    %23 = vector.load %arg6[%c0_14, %c0_15] : memref<16x128xf32, #tpu.memory_space<vmem>>, vector<16x128xf32>
    tpu.vector_store %arg6[%c0_14, %c0_15], %22 {strides = array<i32>} : memref<16x128xf32, #tpu.memory_space<vmem>>, vector<16x128xf32>,
    return
  }
  func.func @transform_0(%arg0: i32) -> (i32, i32) {
    %c0_i32 = arith.constant 0 : i32
    %c0_i32_0 = arith.constant 0 : i32
    return %arg0, %c0_i32 : i32, i32
  }
  func.func @transform_1(%arg0: i32) -> (i32, i32) {
    %c0_i32 = arith.constant 0 : i32
    %c0_i32_0 = arith.constant 0 : i32
    %c0_i32_1 = arith.constant 0 : i32
    return %c0_i32, %c0_i32_0 : i32, i32
  }
  func.func @transform_2(%arg0: i32) -> (i32, i32) {
    %c0_i32 = arith.constant 0 : i32
    %c0_i32_0 = arith.constant 0 : i32
    %c0_i32_1 = arith.constant 0 : i32
    return %c0_i32, %c0_i32_0 : i32, i32
  }
  func.func @transform_3(%arg0: i32) -> (i32, i32) {
    %c0_i32 = arith.constant 0 : i32
    %c0_i32_0 = arith.constant 0 : i32
    %c0_i32_1 = arith.constant 0 : i32
    return %c0_i32, %c0_i32_0 : i32, i32
  }
  func.func @transform_4(%arg0: i32) -> (i32, i32) {
    %c0_i32 = arith.constant 0 : i32
    %c0_i32_0 = arith.constant 0 : i32
    %c0_i32_1 = arith.constant 0 : i32
    return %c0_i32, %c0_i32_0 : i32, i32
  }
  func.func @transform_5(%arg0: i32) -> (i32, i32) {
    %c0_i32 = arith.constant 0 : i32
    %c0_i32_0 = arith.constant 0 : i32
    return %arg0, %c0_i32 : i32, i32
  }
}

</mosaic_0001>

<bundles_post_ra>
// kernel: tpu_custom_call.1
= control target key start
LH: loop header
LB: loop body
LE: loop exit
PB: predicated region body
PF: predicated region fallthrough
CT: control target
= control target key end

     0   :  { %10 = vsyncpa [#allocation3], 0  ;;  %s1063_s0 = inlined_call_operand.hbm [shape: f32[16,128], index: 0, kind: input, shape index: {}]   ;;  %s1064_s1 = inlined_call_operand.hbm [shape: f32[128,512], index: 1, kind: input, shape index: {}]   ;;  %s1065_s2 = inlined_call_operand.vmem [shape: f32[1,512], index: 2, kind: input, shape index: {}]   ;;  %s1066_s3 = inlined_call_operand.hbm [shape: f32[512,128], index: 3, kind: input, shape index: {}]   ;;  %s1067_s4 = inlined_call_operand.vmem [shape: f32[1,128], index: 4, kind: input, shape index: {}]   ;;  %s1068_s5 = inlined_call_operand.hbm [shape: f32[16,128], index: 5, kind: output, shape index: {}]  }
   0x1   :  { %11 = vsyncpa [#allocation6], 0 }
   0x2   :  { %12 = vsyncpa [#allocation4], 0  ;;  %s933_s18 = smov [#allocation5]   ;;  %s839_s22 = scalar_lea.hbm %s1064_s1, 8192 }
   0x3   :  { %s30_s19 = sshll.u32 %s933_s18, 4  ;;  %p840_p0 = scmp.ne.s32.totalorder %s1064_s1, %s839_s22  ;;  %s31_s19 = int_to_ptr.vmem [resolvable:$true] %s30_s19 }
   0x4   :  { %p843_p1 = scmp.lt.u32.totalorder %s839_s22, %s1064_s1 }
   0x6   :  { %p845_p2 = pnand %p843_p1, %p840_p0 }
   0x8   :  { %848 = shalt.err (!%p845_p2)
}
   0x9   :  { %s849_s27 = scalar_lea.vmem %s31_s19, 8192  ;;  %p854_p4 = scmp.lt.s32.totalorder %s31_s19, %s31_s19 }
   0xa   :  { %p850_p3 = scmp.ne.s32.totalorder %s31_s19, %s849_s27  ;;  %p855_p5 = scmp.lt.s32.totalorder %s849_s27, %s849_s27 }
   0xc   :  { %p856_p6 = por %p855_p5, %p854_p4 }
   0xe   :  { %p857_p7 = pnand %p856_p6, %p850_p3 }
  0x10   :  { %860 = shalt.err (!%p857_p7)
}
  0x11   :  { %s934_s28 = smov 512   ;;  %s935_s29 = smov 32  }
  0x12   :  { %36 = dma.hbm_to_vmem [thread:$0]  %s1064_s1, 8192, %s31_s19, [#allocation6], %s934_s28, %s934_s28, %s935_s29  }
  0x13   :  { %s936_s7 = smov [#allocation2]   ;;  %s861_s11 = scalar_lea.hbm %s1063_s0, 256 }
  0x14   :  { %s18_s8 = sshll.u32 %s936_s7, 4  ;;  %p862_p8 = scmp.ne.s32.totalorder %s1063_s0, %s861_s11  ;;  %s19_s8 = int_to_ptr.vmem [resolvable:$true] %s18_s8 }
  0x15   :  { %p865_p9 = scmp.lt.u32.totalorder %s861_s11, %s1063_s0 }
  0x17   :  { %p867_p10 = pnand %p865_p9, %p862_p8 }
  0x19   :  { %870 = shalt.err (!%p867_p10)
}
  0x1a   :  { %s871_s16 = scalar_lea.vmem %s19_s8, 256  ;;  %p876_p12 = scmp.lt.s32.totalorder %s19_s8, %s19_s8 }
  0x1b   :  { %p872_p11 = scmp.ne.s32.totalorder %s19_s8, %s871_s16  ;;  %p877_p13 = scmp.lt.s32.totalorder %s871_s16, %s871_s16 }
  0x1d   :  { %p878_p0 = por %p877_p13, %p876_p12 }
  0x1f   :  { %p879_p1 = pnand %p878_p0, %p872_p11 }
  0x21   :  { %882 = shalt.err (!%p879_p1)
}
  0x22   :  { %s937_s1 = smov 128   ;;  %s938_s17 = smov 8  }
  0x23   :  { %24 = dma.hbm_to_vmem [thread:$0]  %s1063_s0, 256, %s19_s8, [#allocation3], %s937_s1, %s937_s1, %s938_s17  }
  0x24   :  { %s939_s20 = smov [#allocation7]   ;;  %s883_s24 = scalar_lea.hbm %s1066_s3, 8192 }
  0x25   :  { %s44_s21 = sshll.u32 %s939_s20, 4  ;;  %p884_p2 = scmp.ne.s32.totalorder %s1066_s3, %s883_s24  ;;  %s45_s21 = int_to_ptr.vmem [resolvable:$true] %s44_s21 }
  0x26   :  { %p887_p3 = scmp.lt.u32.totalorder %s883_s24, %s1066_s3 }
  0x28   :  { %p889_p4 = pnand %p887_p3, %p884_p2 }
  0x2a   :  { %892 = shalt.err (!%p889_p4)
}
  0x2b   :  { %s893_s29 = scalar_lea.vmem %s45_s21, 8192  ;;  %p898_p6 = scmp.lt.s32.totalorder %s45_s21, %s45_s21 }
  0x2c   :  { %p894_p5 = scmp.ne.s32.totalorder %s45_s21, %s893_s29  ;;  %p899_p7 = scmp.lt.s32.totalorder %s893_s29, %s893_s29 }
  0x2e   :  { %p900_p8 = por %p899_p7, %p898_p6 }
  0x30   :  { %p901_p9 = pnand %p900_p8, %p894_p5 }
  0x32   :  { %904 = shalt.err (!%p901_p9)
}
  0x33   :  { %50 = dma.hbm_to_vmem [thread:$0]  %s1066_s3, 8192, %s45_s21, [#allocation6], %s937_s1, %s937_s1, %s938_s17  }
  0x34   :  { %927 = dma.done.wait [#allocation3], 256  }
  0x35   :  { %928 = vsyncadd [#allocation3], 4294967040 }
  0x36   :  { %929 = dma.done.wait [#allocation6], 16384  }
  0x37   :  { %930 = vsyncadd [#allocation6], 4294950912  ;;  %v940_v0 = vmov 0.0   ;;  %v65_v1 = vld [vmem:[#allocation5 + $0x8] sm:$0xff]  ;;  %v67_v3 = vld [vmem:[#allocation5 + $0x18] sm:$0xff]  ;;  %s941_s8 = smov [#allocation8]  }
  0x38   :  { %214 = vmatprep.mubr.f32.mxu0 %v940_v0  ;;  %291 = vmatprep.mubr.f32.mxu1 %v940_v0  ;;  %v69_v2 = vld [vmem:[#allocation5 + $0x28] sm:$0xff]  ;;  %v71_v5 = vld [vmem:[#allocation5 + $0x38] sm:$0xff]  ;;  %v64_v6 = vld [vmem:[#allocation5] sm:$0xff]  ;;  %s596_s9 = sshll.u32 %s941_s8, 4  ;;  %s597_s9 = int_to_ptr.vmem [resolvable:$true] %s596_s9 }
  0x39   :  { %v686_v4 = vpack.c.bf16 %v69_v2, %v65_v1  ;;  %v68_v7 = vld [vmem:[#allocation5 + $0x20] sm:$0xff]  ;;  %v718_v8 = vpack.c.bf16 %v71_v5, %v67_v3  ;;  %v66_v10 = vld [vmem:[#allocation5 + $0x10] sm:$0xff]  ;;  %v73_v12 = vld [vmem:[#allocation5 + $0x48] sm:$0xff]  ;;  %p910_p11 = scmp.lt.s32.totalorder %s597_s9, %s597_s9 }
  0x3a   :  { %v688_v9 = vpack.c.bf16 %v68_v7, %v64_v6  ;;  %v70_v11 = vld [vmem:[#allocation5 + $0x30] sm:$0xff]  ;;  %v77_v14 = vld [vmem:[#allocation5 + $0x68] sm:$0xff]  ;;  %v75_v15 = vld [vmem:[#allocation5 + $0x58] sm:$0xff] }
  0x3b   :  { %687 = vmatprep.subr.bf16.mxu0 %v686_v4  ;;  %v720_v13 = vpack.c.bf16 %v70_v11, %v66_v10  ;;  %v79_v16 = vld [vmem:[#allocation5 + $0x78] sm:$0xff]  ;;  %719 = vmatprep.subr.bf16.mxu1 %v718_v8  ;;  %v690_v17 = vpack.c.bf16 %v77_v14, %v73_v12  ;;  %v72_v19 = vld [vmem:[#allocation5 + $0x40] sm:$0xff]  ;;  %v74_v21 = vld [vmem:[#allocation5 + $0x50] sm:$0xff] }
  0x3c   :  { %689 = vmatpush1.bf16.msra.mxu0 %v688_v9  ;;  %v722_v18 = vpack.c.bf16 %v79_v16, %v75_v15  ;;  %v76_v20 = vld [vmem:[#allocation5 + $0x60] sm:$0xff]  ;;  %v78_v23 = vld [vmem:[#allocation5 + $0x70] sm:$0xff]  ;;  %v81_v24 = vld [vmem:[#allocation5 + $0x88] sm:$0xff] }
  0x3d   :  { %721 = vmatpush1.bf16.msra.mxu1 %v720_v13  ;;  %v692_v22 = vpack.c.bf16 %v76_v20, %v72_v19  ;;  %v85_v25 = vld [vmem:[#allocation5 + $0xa8] sm:$0xff]  ;;  %691 = vmatprep.subr.bf16.mxu0 %v690_v17  ;;  %v724_v26 = vpack.c.bf16 %v78_v23, %v74_v21  ;;  %v83_v28 = vld [vmem:[#allocation5 + $0x98] sm:$0xff]  ;;  %v80_v30 = vld [vmem:[#allocation5 + $0x80] sm:$0xff] }
  0x3e   :  { %723 = vmatprep.subr.bf16.mxu1 %v722_v18  ;;  %v694_v27 = vpack.c.bf16 %v85_v25, %v81_v24  ;;  %v87_v29 = vld [vmem:[#allocation5 + $0xb8] sm:$0xff]  ;;  %v84_v32 = vld [vmem:[#allocation5 + $0xa0] sm:$0xff]  ;;  %v82_v33 = vld [vmem:[#allocation5 + $0x90] sm:$0xff] }
  0x3f   :  { %v726_v31 = vpack.c.bf16 %v87_v29, %v83_v28  ;;  %v86_v34 = vld [vmem:[#allocation5 + $0xb0] sm:$0xff]  ;;  %v696_v35 = vpack.c.bf16 %v84_v32, %v80_v30  ;;  %v89_v36 = vld [vmem:[#allocation5 + $0xc8] sm:$0xff]  ;;  %v91_v38 = vld [vmem:[#allocation5 + $0xd8] sm:$0xff] }
  0x40   :  { %693 = vmatpush1.bf16.msra.mxu0 %v692_v22  ;;  %v93_v37 = vld [vmem:[#allocation5 + $0xe8] sm:$0xff]  ;;  %v728_v39 = vpack.c.bf16 %v86_v34, %v82_v33  ;;  %v95_v41 = vld [vmem:[#allocation5 + $0xf8] sm:$0xff]  ;;  %v88_v42 = vld [vmem:[#allocation5 + $0xc0] sm:$0xff] }
  0x41   :  { %725 = vmatpush1.bf16.msra.mxu1 %v724_v26  ;;  %695 = vmatprep.subr.bf16.mxu0 %v694_v27  ;;  %v698_v40 = vpack.c.bf16 %v93_v37, %v89_v36  ;;  %v92_v43 = vld [vmem:[#allocation5 + $0xe0] sm:$0xff]  ;;  %v730_v44 = vpack.c.bf16 %v95_v41, %v91_v38  ;;  %v90_v45 = vld [vmem:[#allocation5 + $0xd0] sm:$0xff]  ;;  %v97_v47 = vld [vmem:[#allocation5 + $0x108] sm:$0xff] }
  0x42   :  { %727 = vmatprep.subr.bf16.mxu1 %v726_v31  ;;  %v94_v46 = vld [vmem:[#allocation5 + $0xf0] sm:$0xff]  ;;  %v101_v48 = vld [vmem:[#allocation5 + $0x128] sm:$0xff]  ;;  %v99_v49 = vld [vmem:[#allocation5 + $0x118] sm:$0xff]  ;;  %v700_v51 = vpack.c.bf16 %v92_v43, %v88_v42 }
  0x43   :  { %v103_v50 = vld [vmem:[#allocation5 + $0x138] sm:$0xff]  ;;  %v732_v52 = vpack.c.bf16 %v94_v46, %v90_v45  ;;  %v702_v53 = vpack.c.bf16 %v101_v48, %v97_v47  ;;  %v96_v54 = vld [vmem:[#allocation5 + $0x100] sm:$0xff]  ;;  %v98_v56 = vld [vmem:[#allocation5 + $0x110] sm:$0xff] }
  0x44   :  { %697 = vmatpush1.bf16.msra.mxu0 %v696_v35  ;;  %v100_v55 = vld [vmem:[#allocation5 + $0x120] sm:$0xff]  ;;  %v734_v57 = vpack.c.bf16 %v103_v50, %v99_v49  ;;  %v102_v58 = vld [vmem:[#allocation5 + $0x130] sm:$0xff]  ;;  %v105_v59 = vld [vmem:[#allocation5 + $0x148] sm:$0xff] }
  0x45   :  { %729 = vmatpush1.bf16.msra.mxu1 %v728_v39  ;;  %699 = vmatprep.subr.bf16.mxu0 %v698_v40  ;;  %v109_v60 = vld [vmem:[#allocation5 + $0x168] sm:$0xff]  ;;  %v107_v61 = vld [vmem:[#allocation5 + $0x158] sm:$0xff]  ;;  %v704_v63 = vpack.c.bf16 %v100_v55, %v96_v54  ;;  %v736_v1 = vpack.c.bf16 %v102_v58, %v98_v56  ;;  %v104_v3 = vld [vmem:[#allocation5 + $0x140] sm:$0xff] }
  0x46   :  { %731 = vmatprep.subr.bf16.mxu1 %v730_v44  ;;  %v111_v62 = vld [vmem:[#allocation5 + $0x178] sm:$0xff]  ;;  %v706_v2 = vpack.c.bf16 %v109_v60, %v105_v59  ;;  %v108_v4 = vld [vmem:[#allocation5 + $0x160] sm:$0xff]  ;;  %v106_v5 = vld [vmem:[#allocation5 + $0x150] sm:$0xff] }
  0x47   :  { %v738_v6 = vpack.c.bf16 %v111_v62, %v107_v61  ;;  %v110_v7 = vld [vmem:[#allocation5 + $0x170] sm:$0xff]  ;;  %v113_v8 = vld [vmem:[#allocation5 + $0x188] sm:$0xff]  ;;  %v115_v10 = vld [vmem:[#allocation5 + $0x198] sm:$0xff]  ;;  %v708_v12 = vpack.c.bf16 %v108_v4, %v104_v3 }
  0x48   :  { %701 = vmatpush1.bf16.msra.mxu0 %v700_v51  ;;  %v117_v9 = vld [vmem:[#allocation5 + $0x1a8] sm:$0xff]  ;;  %v119_v11 = vld [vmem:[#allocation5 + $0x1b8] sm:$0xff]  ;;  %v740_v13 = vpack.c.bf16 %v110_v7, %v106_v5  ;;  %v112_v15 = vld [vmem:[#allocation5 + $0x180] sm:$0xff] }
  0x49   :  { %733 = vmatpush1.bf16.msra.mxu1 %v732_v52  ;;  %703 = vmatprep.subr.bf16.mxu0 %v702_v53  ;;  %v710_v14 = vpack.c.bf16 %v117_v9, %v113_v8  ;;  %v116_v16 = vld [vmem:[#allocation5 + $0x1a0] sm:$0xff]  ;;  %v114_v17 = vld [vmem:[#allocation5 + $0x190] sm:$0xff]  ;;  %v742_v18 = vpack.c.bf16 %v119_v11, %v115_v10  ;;  %v121_v20 = vld [vmem:[#allocation5 + $0x1c8] sm:$0xff] }
  0x4a   :  { %735 = vmatprep.subr.bf16.mxu1 %v734_v57  ;;  %v118_v19 = vld [vmem:[#allocation5 + $0x1b0] sm:$0xff]  ;;  %v125_v21 = vld [vmem:[#allocation5 + $0x1e8] sm:$0xff]  ;;  %v123_v22 = vld [vmem:[#allocation5 + $0x1d8] sm:$0xff]  ;;  %v712_v24 = vpack.c.bf16 %v116_v16, %v112_v15 }
  0x4b   :  { %v127_v23 = vld [vmem:[#allocation5 + $0x1f8] sm:$0xff]  ;;  %v744_v25 = vpack.c.bf16 %v118_v19, %v114_v17  ;;  %v714_v26 = vpack.c.bf16 %v125_v21, %v121_v20  ;;  %v120_v27 = vld [vmem:[#allocation5 + $0x1c0] sm:$0xff]  ;;  %v122_v29 = vld [vmem:[#allocation5 + $0x1d0] sm:$0xff] }
  0x4c   :  { %705 = vmatpush1.bf16.msra.mxu0 %v704_v63  ;;  %v124_v28 = vld [vmem:[#allocation5 + $0x1e0] sm:$0xff]  ;;  %v746_v30 = vpack.c.bf16 %v127_v23, %v123_v22  ;;  %v126_v31 = vld [vmem:[#allocation5 + $0x1f0] sm:$0xff]  ;;  %v385_v33 = vld [vmem:[#allocation7 + $0x88] sm:$0xff] }
  0x4d   :  { %737 = vmatpush1.bf16.msra.mxu1 %v736_v1  ;;  %707 = vmatprep.subr.bf16.mxu0 %v706_v2  ;;  %v384_v32 = vld [vmem:[#allocation7 + $0x80] sm:$0xff]  ;;  %v417_v35 = vld [vmem:[#allocation7 + $0x188] sm:$0xff]  ;;  %v716_v36 = vpack.c.bf16 %v124_v28, %v120_v27  ;;  %v748_v37 = vpack.c.bf16 %v126_v31, %v122_v29  ;;  %v62_v44 = vld [vmem:[#allocation2] sm:$0xff] }
  0x4e   :  { %739 = vmatprep.subr.bf16.mxu1 %v738_v6  ;;  %v416_v34 = vld [vmem:[#allocation7 + $0x180] sm:$0xff]  ;;  %v750_v38 = vpack.c.bf16 %v385_v33, %v384_v32  ;;  %v369_v41 = vld [vmem:[#allocation7 + $0x8] sm:$0xff]  ;;  %v63_v47 = vld [vmem:[#allocation2 + $0x8] sm:$0xff] }
  0x4f   :  { %v782_v39 = vpack.c.bf16 %v417_v35, %v416_v34  ;;  %v368_v40 = vld [vmem:[#allocation7] sm:$0xff]  ;;  %v401_v43 = vld [vmem:[#allocation7 + $0x108] sm:$0xff]  ;;  %v386_v48 = vld [vmem:[#allocation7 + $0x90] sm:$0xff] }
  0x50   :  { %709 = vmatpush1.bf16.msra.mxu0 %v708_v12  ;;  %v400_v42 = vld [vmem:[#allocation7 + $0x100] sm:$0xff]  ;;  %v752_v45 = vpack.c.bf16 %v369_v41, %v368_v40  ;;  %v387_v49 = vld [vmem:[#allocation7 + $0x98] sm:$0xff]  ;;  %v418_v50 = vld [vmem:[#allocation7 + $0x190] sm:$0xff] }
  0x51   :  { %741 = vmatpush1.bf16.msra.mxu1 %v740_v13  ;;  %711 = vmatprep.subr.bf16.mxu0 %v710_v14  ;;  %v784_v46 = vpack.c.bf16 %v401_v43, %v400_v42  ;;  %v754_v51 = vpack.c.bf16 %v387_v49, %v386_v48  ;;  %v419_v52 = vld [vmem:[#allocation7 + $0x198] sm:$0xff]  ;;  %v370_v54 = vld [vmem:[#allocation7 + $0x10] sm:$0xff]  ;;  %v389_v60 = vld [vmem:[#allocation7 + $0xa8] sm:$0xff] }
  0x52   :  { %743 = vmatprep.subr.bf16.mxu1 %v742_v18  ;;  %v786_v53 = vpack.c.bf16 %v419_v52, %v418_v50  ;;  %v371_v55 = vld [vmem:[#allocation7 + $0x18] sm:$0xff]  ;;  %v402_v56 = vld [vmem:[#allocation7 + $0x110] sm:$0xff]  ;;  %v420_v61 = vld [vmem:[#allocation7 + $0x1a0] sm:$0xff] }
  0x53   :  { %v756_v57 = vpack.c.bf16 %v371_v55, %v370_v54  ;;  %v403_v58 = vld [vmem:[#allocation7 + $0x118] sm:$0xff]  ;;  %v421_v63 = vld [vmem:[#allocation7 + $0x1a8] sm:$0xff]  ;;  %v372_v2 = vld [vmem:[#allocation7 + $0x20] sm:$0xff] }
  0x54   :  { %713 = vmatpush1.bf16.msra.mxu0 %v712_v24  ;;  %v788_v59 = vpack.c.bf16 %v403_v58, %v402_v56  ;;  %v790_v1 = vpack.c.bf16 %v421_v63, %v420_v61  ;;  %v373_v3 = vld [vmem:[#allocation7 + $0x28] sm:$0xff]  ;;  %v404_v4 = vld [vmem:[#allocation7 + $0x120] sm:$0xff]  ;;  %v390_v8 = vld [vmem:[#allocation7 + $0xb0] sm:$0xff] }
  0x55   :  { %745 = vmatpush1.bf16.msra.mxu1 %v744_v25  ;;  %715 = vmatprep.subr.bf16.mxu0 %v714_v26  ;;  %v760_v5 = vpack.c.bf16 %v373_v3, %v372_v2  ;;  %v405_v6 = vld [vmem:[#allocation7 + $0x128] sm:$0xff]  ;;  %v391_v9 = vld [vmem:[#allocation7 + $0xb8] sm:$0xff]  ;;  %v422_v10 = vld [vmem:[#allocation7 + $0x1b0] sm:$0xff] }
  0x56   :  { %747 = vmatprep.subr.bf16.mxu1 %v746_v30  ;;  %v792_v7 = vpack.c.bf16 %v405_v6, %v404_v4  ;;  %v762_v11 = vpack.c.bf16 %v391_v9, %v390_v8  ;;  %v423_v12 = vld [vmem:[#allocation7 + $0x1b8] sm:$0xff]  ;;  %v374_v13 = vld [vmem:[#allocation7 + $0x30] sm:$0xff]  ;;  %v392_v20 = vld [vmem:[#allocation7 + $0xc0] sm:$0xff]  ;;  %v130_v4 = vlaneseq }
  0x57   :  { %v375_v14 = vld [vmem:[#allocation7 + $0x38] sm:$0xff]  ;;  %v794_v15 = vpack.c.bf16 %v423_v12, %v422_v10  ;;  %v406_v17 = vld [vmem:[#allocation7 + $0x130] sm:$0xff]  ;;  %v393_v21 = vld [vmem:[#allocation7 + $0xc8] sm:$0xff] }
  0x58   :  { %717 = vmatpush1.bf16.msra.mxu0 %v716_v36  ;;  %v764_v16 = vpack.c.bf16 %v375_v14, %v374_v13  ;;  %v407_v18 = vld [vmem:[#allocation7 + $0x138] sm:$0xff]  ;;  %v424_v22 = vld [vmem:[#allocation7 + $0x1c0] sm:$0xff]  ;;  %v766_v23 = vpack.c.bf16 %v393_v21, %v392_v20  ;;  %v425_v24 = vld [vmem:[#allocation7 + $0x1c8] sm:$0xff] }
  0x59   :  { %749 = vmatpush1.bf16.msra.mxu1 %v748_v37  ;;  %751 = vmatprep.subr.bf16.mxu0 %v750_v38  ;;  %v796_v19 = vpack.c.bf16 %v407_v18, %v406_v17  ;;  %v376_v25 = vld [vmem:[#allocation7 + $0x40] sm:$0xff]  ;;  %v377_v26 = vld [vmem:[#allocation7 + $0x48] sm:$0xff]  ;;  %v798_v27 = vpack.c.bf16 %v425_v24, %v424_v22  ;;  %v394_v32 = vld [vmem:[#allocation7 + $0xd0] sm:$0xff] }
  0x5a   :  { %783 = vmatprep.subr.bf16.mxu1 %v782_v39  ;;  %v768_v28 = vpack.c.bf16 %v377_v26, %v376_v25  ;;  %v408_v29 = vld [vmem:[#allocation7 + $0x140] sm:$0xff]  ;;  %v409_v30 = vld [vmem:[#allocation7 + $0x148] sm:$0xff]  ;;  %v395_v33 = vld [vmem:[#allocation7 + $0xd8] sm:$0xff] }
  0x5b   :  { %215 = vmatmul.mubr.f32.vlgmr.msra.gmra.mrb[0].mxu0 %v62_v44  ;;  %v800_v31 = vpack.c.bf16 %v409_v30, %v408_v29  ;;  %v426_v34 = vld [vmem:[#allocation7 + $0x1d0] sm:$0xff]  ;;  %v770_v35 = vpack.c.bf16 %v395_v33, %v394_v32  ;;  %v427_v36 = vld [vmem:[#allocation7 + $0x1d8] sm:$0xff]  ;;  %v429_v48 = vld [vmem:[#allocation7 + $0x1e8] sm:$0xff] }
  0x5c   :  { %292 = vmatmul.mubr.f32.vlgmr.msra.gmra.mrb[0].mxu1 %v62_v44  ;;  %220 = vmatprep.mubr.f32.mxu0 %v940_v0  ;;  %v378_v37 = vld [vmem:[#allocation7 + $0x50] sm:$0xff]  ;;  %v379_v38 = vld [vmem:[#allocation7 + $0x58] sm:$0xff]  ;;  %v802_v39 = vpack.c.bf16 %v427_v36, %v426_v34  ;;  %v396_v44 = vld [vmem:[#allocation7 + $0xe0] sm:$0xff] }
  0x5d   :  { %297 = vmatprep.mubr.f32.mxu1 %v940_v0  ;;  %753 = vmatpush3.bf16.msra.mxu0 %v752_v45  ;;  %v388_v0 = vld [vmem:[#allocation7 + $0xa0] sm:$0xff]  ;;  %v772_v40 = vpack.c.bf16 %v379_v38, %v378_v37  ;;  %v410_v41 = vld [vmem:[#allocation7 + $0x150] sm:$0xff]  ;;  %v411_v42 = vld [vmem:[#allocation7 + $0x158] sm:$0xff] }
  0x5e   :  { %785 = vmatpush3.bf16.msra.mxu1 %v784_v46  ;;  %755 = vmatprep.subr.bf16.mxu0 %v754_v51  ;;  %v758_v62 = vpack.c.bf16 %v389_v60, %v388_v0  ;;  %v804_v43 = vpack.c.bf16 %v411_v42, %v410_v41  ;;  %v397_v45 = vld [vmem:[#allocation7 + $0xe8] sm:$0xff]  ;;  %v428_v46 = vld [vmem:[#allocation7 + $0x1e0] sm:$0xff]  ;;  %v398_v55 = vld [vmem:[#allocation7 + $0xf0] sm:$0xff] }
  0x5f   :  { %221 = vmatmul.mubr.f32.gmra.mrb[2].mxu0 %v63_v47  ;;  %787 = vmatprep.subr.bf16.mxu1 %v786_v53  ;;  %v380_v49 = vld [vmem:[#allocation7 + $0x60] sm:$0xff]  ;;  %v381_v50 = vld [vmem:[#allocation7 + $0x68] sm:$0xff]  ;;  %v806_v51 = vpack.c.bf16 %v429_v48, %v428_v46  ;;  %v430_v58 = vld [vmem:[#allocation7 + $0x1f0] sm:$0xff] }
  0x60   :  { %298 = vmatmul.mubr.f32.gmra.mrb[2].mxu1 %v63_v47  ;;  %v774_v47 = vpack.c.bf16 %v397_v45, %v396_v44  ;;  %v776_v52 = vpack.c.bf16 %v381_v50, %v380_v49  ;;  %v412_v53 = vld [vmem:[#allocation7 + $0x160] sm:$0xff]  ;;  %v413_v54 = vld [vmem:[#allocation7 + $0x168] sm:$0xff]  ;;  %v382_v61 = vld [vmem:[#allocation7 + $0x70] sm:$0xff] }
  0x61   :  { %757 = vmatpush3.bf16.msra.mxu0 %v756_v57  ;;  %v808_v56 = vpack.c.bf16 %v413_v54, %v412_v53  ;;  %v399_v57 = vld [vmem:[#allocation7 + $0xf8] sm:$0xff]  ;;  %v414_v63 = vld [vmem:[#allocation7 + $0x170] sm:$0xff] }
  0x62   :  { %789 = vmatpush3.bf16.msra.mxu1 %v788_v59  ;;  %759 = vmatprep.subr.bf16.mxu0 %v758_v62  ;;  %v431_v59 = vld [vmem:[#allocation7 + $0x1f8] sm:$0xff]  ;;  %v778_v0 = vpack.c.bf16 %v399_v57, %v398_v55 }
  0x63   :  { %791 = vmatprep.subr.bf16.mxu1 %v790_v1  ;;  %v810_v60 = vpack.c.bf16 %v431_v59, %v430_v58  ;;  %v383_v62 = vld [vmem:[#allocation7 + $0x78] sm:$0xff] }
  0x64   :  { %v780_v1 = vpack.c.bf16 %v383_v62, %v382_v61  ;;  %v415_v2 = vld [vmem:[#allocation7 + $0x178] sm:$0xff] }
  0x65   :  { %761 = vmatpush3.bf16.msra.mxu0 %v760_v5  ;;  %v812_v3 = vpack.c.bf16 %v415_v2, %v414_v63  ;;  %v131_v5 = vshrl.u32 %v130_v4, 7 }
  0x66   :  { %793 = vmatpush3.bf16.msra.mxu1 %v792_v7  ;;  %763 = vmatprep.subr.bf16.mxu0 %v762_v11  ;;  %v128_v7 = vld [vmem:[%s1065_s2] sm:$0xf] }
  0x67   :  { %795 = vmatprep.subr.bf16.mxu1 %v794_v15  ;;  %v132_v6 = vsub.s32 0, %v131_v5  ;;  %v140_v8 = vsub.s32 2, %v131_v5  ;;  %v136_v9 = vsub.s32 1, %v131_v5  ;;  %v144_v10 = vsub.s32 3, %v131_v5 }
  0x69   :  { %765 = vmatpush3.bf16.msra.mxu0 %v764_v16  ;;  %v133_v11 = vrot.slane %v128_v7, %v132_v6  ;;  %v141_v12 = vrot.slane %v128_v7, %v140_v8  ;;  %v137_v13 = vrot.slane %v128_v7, %v136_v9  ;;  %v145_v14 = vrot.slane %v128_v7, %v144_v10 }
  0x6a   :  { %797 = vmatpush3.bf16.msra.mxu1 %v796_v19  ;;  %767 = vmatprep.subr.bf16.mxu0 %v766_v23 }
  0x6b   :  { %799 = vmatprep.subr.bf16.mxu1 %v798_v27 }
  0x6d   :  { %769 = vmatpush3.bf16.msra.mxu0 %v768_v28 }
  0x6e   :  { %801 = vmatpush3.bf16.msra.mxu1 %v800_v31  ;;  %771 = vmatprep.subr.bf16.mxu0 %v770_v35 }
  0x6f   :  { %803 = vmatprep.subr.bf16.mxu1 %v802_v39 }
  0x71   :  { %773 = vmatpush3.bf16.msra.mxu0 %v772_v40 }
  0x72   :  { %805 = vmatpush3.bf16.msra.mxu1 %v804_v43  ;;  %775 = vmatprep.subr.bf16.mxu0 %v774_v47 }
  0x73   :  { %807 = vmatprep.subr.bf16.mxu1 %v806_v51 }
  0x75   :  { %777 = vmatpush3.bf16.msra.mxu0 %v776_v52 }
  0x76   :  { %809 = vmatpush3.bf16.msra.mxu1 %v808_v56  ;;  %779 = vmatprep.subr.bf16.mxu0 %v778_v0 }
  0x77   :  { %811 = vmatprep.subr.bf16.mxu1 %v810_v60 }
  0x79   :  { %781 = vmatpush3.bf16.msra.mxu0 %v780_v1 }
  0x7a   :  { %813 = vmatpush3.bf16.msra.mxu1 %v812_v3 }
 0x12e   :  { %v216_v15 = vpop.f32.mrb[0].mxu0 }
 0x12f   :  { %v1021_v16 = vadd.f32 %v216_v15, %v133_v11  ;;  %v293_v17 = vpop.f32.mrb[0].mxu1  ;;  %v218_v18 = vpop.f32.mrb[1].mxu0 }
 0x130   :  { %v1023_v19 = vadd.f32 %v293_v17, %v141_v12  ;;  %v219_v20 = vadd.f32 %v218_v18, %v137_v13  ;;  %v295_v21 = vpop.f32.mrb[1].mxu1 }
 0x131   :  { %v304_v22 = vmul.f32 %v1021_v16, %v1021_v16  ;;  %v296_v23 = vadd.f32 %v295_v21, %v145_v14  ;;  %v336_v8 = vmul.f32 0.5, %v1021_v16 }
 0x132   :  { %v306_v24 = vmul.f32 %v1023_v19, %v1023_v19  ;;  %v305_v25 = vmul.f32 %v219_v20, %v219_v20  ;;  %v222_v26 = vpop.f32.mrb[2].mxu0  ;;  %v337_v5 = vmul.f32 0.5, %v219_v20 }
 0x133   :  { %v312_v27 = vmul.f32 0.035677407, %v304_v22  ;;  %v307_v28 = vmul.f32 %v296_v23, %v296_v23  ;;  %v1029_v29 = vadd.f32 %v222_v26, %v133_v11  ;;  %v299_v30 = vpop.f32.mrb[2].mxu1  ;;  %v224_v31 = vpop.f32.mrb[3].mxu0  ;;  %v339_v9 = vmul.f32 0.5, %v296_v23 }
 0x134   :  { %v314_v32 = vmul.f32 0.035677407, %v306_v24  ;;  %v313_v33 = vmul.f32 0.035677407, %v305_v25  ;;  %v1031_v34 = vadd.f32 %v299_v30, %v141_v12  ;;  %v225_v35 = vadd.f32 %v224_v31, %v137_v13  ;;  %v301_v36 = vpop.f32.mrb[3].mxu1 }
 0x135   :  { %v320_v37 = vadd.f32 0.7978846, %v312_v27  ;;  %v315_v38 = vmul.f32 0.035677407, %v307_v28  ;;  %v308_v39 = vmul.f32 %v1029_v29, %v1029_v29  ;;  %v302_v54 = vadd.f32 %v301_v36, %v145_v14 }
 0x136   :  { %v322_v40 = vadd.f32 0.7978846, %v314_v32  ;;  %v321_v41 = vadd.f32 0.7978846, %v313_v33  ;;  %v310_v42 = vmul.f32 %v1031_v34, %v1031_v34  ;;  %v309_v46 = vmul.f32 %v225_v35, %v225_v35 }
 0x137   :  { %v328_v43 = vmul.f32 %v320_v37, %v1021_v16  ;;  %v323_v44 = vadd.f32 0.7978846, %v315_v38  ;;  %v316_v45 = vmul.f32 0.035677407, %v308_v39  ;;  %v311_v57 = vmul.f32 %v302_v54, %v302_v54 }
 0x138   :  { %v330_v47 = vmul.f32 %v322_v40, %v1023_v19  ;;  %v329_v48 = vmul.f32 %v321_v41, %v219_v20  ;;  %v318_v49 = vmul.f32 0.035677407, %v310_v42  ;;  %v317_v52 = vmul.f32 0.035677407, %v309_v46 }
 0x139   :  { %823 = vtanh.f32 %v328_v43  ;;  %v331_v50 = vmul.f32 %v323_v44, %v296_v23  ;;  %v324_v51 = vadd.f32 0.7978846, %v316_v45  ;;  %v319_v0 = vmul.f32 0.035677407, %v311_v57 }
 0x13a   :  { %825 = vtanh.f32 %v330_v47  ;;  %v326_v53 = vadd.f32 0.7978846, %v318_v49  ;;  %v325_v56 = vadd.f32 0.7978846, %v317_v52  ;;  %v338_v11 = vmul.f32 0.5, %v1023_v19 }
 0x13b   :  { %827 = vtanh.f32 %v329_v48  ;;  %v332_v55 = vmul.f32 %v324_v51, %v1029_v29  ;;  %v327_v60 = vadd.f32 0.7978846, %v319_v0  ;;  %v341_v21 = vmul.f32 0.5, %v225_v35 }
 0x13c   :  { %829 = vtanh.f32 %v331_v50  ;;  %v334_v58 = vmul.f32 %v326_v53, %v1031_v34  ;;  %v333_v59 = vmul.f32 %v325_v56, %v225_v35  ;;  %v340_v20 = vmul.f32 0.5, %v1029_v29  ;;  %v609_v29 = vld [vmem:[%s1067_s4] ss:$0 sm:$0xff]  ;;  %s905_s4 = scalar_lea.vmem %s597_s9, 256 }
 0x13d   :  { %831 = vtanh.f32 %v332_v55  ;;  %v335_v61 = vmul.f32 %v327_v60, %v302_v54  ;;  %v343_v26 = vmul.f32 0.5, %v302_v54  ;;  %v342_v28 = vmul.f32 0.5, %v1031_v34  ;;  %p906_p10 = scmp.ne.s32.totalorder %s597_s9, %s905_s4  ;;  %p911_p12 = scmp.lt.s32.totalorder %s905_s4, %s905_s4 }
 0x13e   :  { %833 = vtanh.f32 %v333_v59 }
 0x13f   :  { %835 = vtanh.f32 %v334_v58  ;;  %p912_p13 = por %p911_p12, %p910_p11 }
 0x140   :  { %837 = vtanh.f32 %v335_v61 }
 0x141   :  { %p913_p0 = pnand %p912_p13, %p906_p10 }
 0x143   :  { %v824_v62 = vpop.eup %823 }
 0x144   :  { %v826_v63 = vpop.eup %825  ;;  %v352_v2 = vadd.f32 1.0, %v824_v62 }
 0x145   :  { %v828_v1 = vpop.eup %827  ;;  %v354_v4 = vadd.f32 1.0, %v826_v63 }
 0x146   :  { %v830_v3 = vpop.eup %829  ;;  %v353_v6 = vadd.f32 1.0, %v828_v1  ;;  %v360_v14 = vmul.f32 %v352_v2, %v336_v8 }
 0x147   :  { %v832_v7 = vpop.eup %831  ;;  %v355_v10 = vadd.f32 1.0, %v830_v3  ;;  %v362_v18 = vmul.f32 %v354_v4, %v338_v11 }
 0x148   :  { %v361_v12 = vmul.f32 %v353_v6, %v337_v5  ;;  %v834_v13 = vpop.eup %833  ;;  %v356_v17 = vadd.f32 1.0, %v832_v7 }
 0x149   :  { %v363_v15 = vmul.f32 %v355_v10, %v339_v9  ;;  %v357_v22 = vadd.f32 1.0, %v834_v13  ;;  %v836_v24 = vpop.eup %835 }
 0x14a   :  { %503 = vmatprep.mubr.f32.mxu0 %v361_v12  ;;  %v364_v23 = vmul.f32 %v356_v17, %v340_v20  ;;  %v838_v25 = vpop.eup %837  ;;  %v358_v19 = vadd.f32 1.0, %v836_v24 }
 0x14b   :  { %578 = vmatprep.mubr.f32.mxu1 %v363_v15  ;;  %504 = vmatmul.mubr.f32.vlgmr.msra.gmra.mrb[4].mxu0 %v360_v14  ;;  %v365_v16 = vmul.f32 %v357_v22, %v341_v21  ;;  %v359_v27 = vadd.f32 1.0, %v838_v25 }
 0x14c   :  { %579 = vmatmul.mubr.f32.vlgmr.msra.gmra.mrb[4].mxu1 %v362_v18  ;;  %v366_v31 = vmul.f32 %v358_v19, %v342_v28 }
 0x14d   :  { %508 = vmatprep.mubr.f32.mxu0 %v365_v16  ;;  %v367_v30 = vmul.f32 %v359_v27, %v343_v26 }
 0x14f   :  { %509 = vmatmul.mubr.f32.gmra.mrb[6].mxu0 %v364_v23  ;;  %583 = vmatprep.mubr.f32.mxu1 %v367_v30 }
 0x150   :  { %584 = vmatmul.mubr.f32.gmra.mrb[6].mxu1 %v366_v31 }
 0x21e   :  { %v642_v32 = vpop.f32.mrb[4].mxu0 }
 0x21f   :  { %v680_v33 = vpop.f32.mrb[4].mxu1  ;;  %v643_v35 = vpop.f32.mrb[5].mxu0 }
 0x220   :  { %v644_v36 = vadd.f32 %v643_v35, %v642_v32  ;;  %v681_v37 = vpop.f32.mrb[5].mxu1 }
 0x221   :  { %v682_v38 = vadd.f32 %v681_v37, %v680_v33 }
 0x222   :  { %v506_v39 = vadd.f32 %v644_v36, %v609_v29  ;;  %v645_v40 = vpop.f32.mrb[6].mxu0 }
 0x223   :  { %v646_v41 = vpop.f32.mrb[7].mxu0  ;;  %v683_v34 = vpop.f32.mrb[6].mxu1 }
 0x224   :  { %v581_v42 = vadd.f32 %v682_v38, %v506_v39  ;;  %v647_v43 = vadd.f32 %v646_v41, %v645_v40  ;;  %v684_v45 = vpop.f32.mrb[7].mxu1 }
 0x225   :  { %v685_v46 = vadd.f32 %v684_v45, %v683_v34 }
 0x226   :  { %589 = vst [vmem:[#allocation8] sm:$0xff] %v581_v42  ;;  %v511_v44 = vadd.f32 %v647_v43, %v609_v29 }
 0x228   :  { %v586_v47 = vadd.f32 %v685_v46, %v511_v44 }
 0x22a   :  { %590 = vst [vmem:[#allocation8 + $0x8] sm:$0xff] %v586_v47 }
 0x22b   :  { %916 = shalt.err (!%p913_p0)
}
 0x22c   :  { %s917_s12 = scalar_lea.hbm %s1068_s5, 256 }
 0x22d   :  { %p918_p1 = scmp.ne.s32.totalorder %s1068_s5, %s917_s12  ;;  %p921_p2 = scmp.lt.u32.totalorder %s917_s12, %s1068_s5 }
 0x22f   :  { %p923_p3 = pnand %p921_p2, %p918_p1 }
 0x231   :  { %926 = shalt.err (!%p923_p3)
}
 0x232   :  { %602 = dma.vmem_to_hbm [thread:$0]  %s597_s9, 256, %s1068_s5, [#allocation4], %s937_s1, %s937_s1, %s938_s17  }
 0x233   :  { %931 = dma.done.wait [#allocation4], 256  }
 0x234   :  { %932 = vsyncadd [#allocation4], 4294967040 }
 0x235   :  { %606 = vsyncpa [#allocation3], 1 }
 0x236   :  { %607 = vsyncpa [#allocation6], 1 }
 0x237   :  { %608 = vsyncpa [#allocation4], 1 }

</bundles_post_ra>
